<compile_context>
chip_gen: v5e
topology: v5e:2x2
jax: 0.10.0
libtpu: 0.0.40
codegen_flags: <defaults>
</compile_context>

<pallas_src>
import functools

import jax
import jax.numpy as jnp
from jax import lax
from jax.experimental import pallas as pl
from jax.experimental.pallas import tpu as pltpu


def _conv_in_lrelu_kernel(p_ref, w_ref, g_ref, b_ref, o_ref, acc_ref, *,
                          m, eps, negative_slope):
    # p_ref:   (B*M, Kdim)   bf16 im2col patches for B samples (this grid step)
    # w_ref:   (Kdim, C_out) bf16 conv weight, (kh,kw,c)-ordered, resident across steps
    # g_ref:   (1, C_out)    f32 InstanceNorm gamma
    # b_ref:   (1, C_out)    f32 InstanceNorm beta
    # o_ref:   (B*M, C_out)  bf16 output block
    # acc_ref: (B*M, C_out)  f32 VMEM scratch accumulator
    #
    # One large MXU GEMM for the whole B-sample block, f32 accumulation in VMEM.
    acc_ref[...] = jnp.dot(p_ref[...], w_ref[...],
                           preferred_element_type=jnp.float32)

    gamma = g_ref[...]
    beta = b_ref[...]
    n_samples = o_ref.shape[0] // m

    # Streamed epilogue: one sample (M rows) at a time so the live f32 working set
    # stays ~M*C_out regardless of B (bounds vreg pressure under the MXU drain).
    for s in range(n_samples):
        row = s * m
        x = acc_ref[pl.ds(row, m), :]                       # (M, C_out) f32
        # InstanceNorm2d: per-sample, per-channel stats over spatial positions (rows).
        mean = jnp.mean(x, axis=0, keepdims=True)           # (1, C_out)
        xc = x - mean
        var = jnp.mean(xc * xc, axis=0, keepdims=True)      # centered -> never negative
        h = xc * lax.rsqrt(var + eps) * gamma + beta
        # LeakyReLU(0.2), stored as bf16.
        o_ref[pl.ds(row, m), :] = jnp.where(
            h >= 0, h, negative_slope * h).astype(o_ref.dtype)


def _pick_block_batch(n, m, kdim, c_out, vmem_budget_bytes=12 << 20):
    """Samples per grid step: VMEM-budgeted, but keep >=2 grid steps when N>=2."""
    # Per-sample footprint: double-buffered bf16 patches + double-buffered bf16
    # output + f32 accumulator scratch (weight/gamma/beta are tiny & resident).
    per_sample = m * (2 * kdim * 2 + 2 * c_out * 2 + c_out * 4)
    b_vmem = max(1, vmem_budget_bytes // per_sample)
    b_grid = max(1, pl.cdiv(n, 2))        # >=2 steps so both v7x TCs get work
    return int(max(1, min(b_vmem, b_grid, n)))


def feature_layer_forward(x_nchw, conv_weight, in_gamma, in_beta, *,
                          eps=1e-5, negative_slope=0.2,
                          channels_last=False, out_dtype=jnp.bfloat16):
    """FeatureLayer.forward (norm='IN', extra_layers=0).

    x_nchw:      (N, C_in, H, W)
    conv_weight: (C_out, C_in, 4, 4)   PyTorch Conv2d weight layout (bias=False)
    in_gamma:    (C_out,)              InstanceNorm2d weight
    in_beta:     (C_out,)              InstanceNorm2d bias
    returns:     (N, C_out, H//2, W//2) if channels_last=False (module layout),
                 else (N, H//2, W//2, C_out) (recommended when chaining layers).
    """
    N, C_in, H, W = x_nchw.shape
    C_out = conv_weight.shape[0]
    KH, KW, stride, pad = 4, 4, 2, 1
    assert conv_weight.shape == (C_out, C_in, KH, KW)

    OH = (H + 2 * pad - KH) // stride + 1
    OW = (W + 2 * pad - KW) // stride + 1
    M = OH * OW
    Kdim = C_in * KH * KW

    # --- im2col in the wrapper (layout plumbing only; all compute is in-kernel) ---
    # NHWC bf16 copy first so the 4x-inflated patch tensor is built in half-width
    # and already in (kh, kw, c) K-ordering -> plain reshape, no 5D transpose.
    x_nhwc = jnp.transpose(x_nchw, (0, 2, 3, 1)).astype(jnp.bfloat16)
    x_pad = jnp.pad(x_nhwc, ((0, 0), (pad, pad), (pad, pad), (0, 0)))
    cols = []
    for kh in range(KH):
        for kw in range(KW):
            cols.append(
                x_pad[:, kh:kh + stride * (OH - 1) + 1:stride,
                         kw:kw + stride * (OW - 1) + 1:stride, :]
            )  # (N, OH, OW, C_in)
    patches = jnp.concatenate(cols, axis=-1).reshape(N, M, Kdim)   # (kh,kw,c) order

    # Weight pre-transposed once to (Kdim, C_out) in matching (kh,kw,c) order ->
    # standard (M,K)x(K,N) contraction on the MXU, no in-kernel layout work.
    w2d_bf16 = jnp.transpose(conv_weight, (2, 3, 1, 0)).reshape(Kdim, C_out)
    w2d_bf16 = w2d_bf16.astype(jnp.bfloat16)
    gamma2d = in_gamma.reshape(1, C_out).astype(jnp.float32)
    beta2d = in_beta.reshape(1, C_out).astype(jnp.float32)

    # --- batching: B samples per grid step ---
    B = _pick_block_batch(N, M, Kdim, C_out)
    n_steps = pl.cdiv(N, B)
    N_pad = n_steps * B
    if N_pad != N:
        patches = jnp.pad(patches, ((0, N_pad - N), (0, 0), (0, 0)))
    patches2d = patches.reshape(N_pad * M, Kdim)
    BM = B * M

    kernel = functools.partial(
        _conv_in_lrelu_kernel, m=M, eps=eps, negative_slope=negative_slope)

    out2d = pl.pallas_call(
        kernel,
        out_shape=jax.ShapeDtypeStruct((N_pad * M, C_out), out_dtype),
        grid=(n_steps,),
        in_specs=[
            pl.BlockSpec((BM, Kdim), lambda i: (i, 0)),    # streaming patches block
            pl.BlockSpec((Kdim, C_out), lambda i: (0, 0)),  # weight (resident)
            pl.BlockSpec((1, C_out), lambda i: (0, 0)),     # gamma  (resident)
            pl.BlockSpec((1, C_out), lambda i: (0, 0)),     # beta   (resident)
        ],
        out_specs=pl.BlockSpec((BM, C_out), lambda i: (i, 0)),
        scratch_shapes=[pltpu.VMEM((BM, C_out), jnp.float32)],
        compiler_params=pltpu.CompilerParams(
            dimension_semantics=("parallel",),
            vmem_limit_bytes=32 << 20,
        ),
        cost_estimate=pl.CostEstimate(
            flops=2 * N_pad * M * Kdim * C_out,
            transcendentals=N_pad * C_out,  # rsqrt per (sample, channel)
            bytes_accessed=(N_pad * M * Kdim * 2 + Kdim * C_out * 2
                            + 2 * C_out * 4 + N_pad * M * C_out * 2),
        ),
    )(patches2d, w2d_bf16, gamma2d, beta2d)

    out = out2d.reshape(N_pad, OH, OW, C_out)[:N]       # channel-last (lane-dense)
    if channels_last:
        return out
    # Module layout (NCHW). When chaining FeatureLayers prefer channels_last=True
    # to skip this full HBM round trip.
    return jnp.transpose(out, (0, 3, 1, 2))


if __name__ == "__main__":
    # FeatureLayer(scale=1, in_channels=4, norm='IN', extra_layers=0)
    N, C_in, H = 2, 4, 16
    scale = 1
    C_out = 64 * min(2 ** scale, 16)  # 128
    eps, slope = 1e-5, 0.2

    key = jax.random.PRNGKey(0)
    kx, kw, kg, kb = jax.random.split(key, 4)

    x = jax.random.normal(kx, (N, C_in, H, H), dtype=jnp.float32)

    # Conv2d default init: uniform(-1/sqrt(fan_in), 1/sqrt(fan_in)), bias=False.
    fan_in = C_in * 4 * 4
    bound = 1.0 / (fan_in ** 0.5)
    conv_w = jax.random.uniform(kw, (C_out, C_in, 4, 4), jnp.float32, -bound, bound)
    # InstanceNorm2d(affine=True) params (perturbed from ones/zeros to exercise affine).
    gamma = 1.0 + 0.1 * jax.random.normal(kg, (C_out,), jnp.float32)
    beta = 0.1 * jax.random.normal(kb, (C_out,), jnp.float32)

    out = feature_layer_forward(x, conv_w, gamma, beta, eps=eps, negative_slope=slope)
    out = jax.block_until_ready(out)

    # Pure-JAX f32 reference: conv -> instance norm -> leaky relu.
    conv = lax.conv_general_dilated(
        x, conv_w, window_strides=(2, 2), padding=((1, 1), (1, 1)),
        dimension_numbers=("NCHW", "OIHW", "NCHW"))
    mu = conv.mean(axis=(2, 3), keepdims=True)
    var = conv.var(axis=(2, 3), keepdims=True)
    ref = (conv - mu) / jnp.sqrt(var + eps)
    ref = ref * gamma.reshape(1, C_out, 1, 1) + beta.reshape(1, C_out, 1, 1)
    ref = jnp.where(ref >= 0, ref, slope * ref)

    assert out.shape == (N, C_out, H // 2, H // 2), out.shape
    err = float(jnp.max(jnp.abs(out.astype(jnp.float32) - ref)))
    assert jnp.allclose(out.astype(jnp.float32), ref, atol=5e-2, rtol=5e-2), \
        f"max abs err = {err}"

    print("KERNEL_OK")
</pallas_src>

<mosaic_0001>
module attributes {stable_mosaic.version = 11 : i64} {
  func.func @_conv_in_lrelu_kernel(%arg0: i32, %arg1: memref<64x64xbf16, #tpu.memory_space<vmem>>, %arg2: memref<64x128xbf16, #tpu.memory_space<vmem>>, %arg3: memref<1x128xf32, #tpu.memory_space<vmem>>, %arg4: memref<1x128xf32, #tpu.memory_space<vmem>>, %arg5: memref<64x128xbf16, #tpu.memory_space<vmem>>, %arg6: memref<64x128xf32, #tpu.memory_space<vmem>>) attributes {dimension_semantics = [#tpu.dimension_semantics<parallel>], iteration_bounds = array<i64: 2>, scalar_prefetch = 0 : i64, scratch_operands = 1 : i64, tpu.core_type = #tpu.core_type<tc>, window_params = [{transform_indices = @transform_0, window_bounds = array<i64: 64, 64>}, {pipeline_mode = #tpu.pipeline_mode<synchronous>, transform_indices = @transform_1, window_bounds = array<i64: 64, 128>}, {pipeline_mode = #tpu.pipeline_mode<synchronous>, transform_indices = @transform_2, window_bounds = array<i64: 1, 128>}, {pipeline_mode = #tpu.pipeline_mode<synchronous>, transform_indices = @transform_3, window_bounds = array<i64: 1, 128>}, {transform_indices = @transform_4, window_bounds = array<i64: 64, 128>}]} {
    %c0 = arith.constant 0 : index
    %c0_0 = arith.constant 0 : index
    %0 = vector.load %arg1[%c0, %c0_0] : memref<64x64xbf16, #tpu.memory_space<vmem>>, vector<64x64xbf16>
    %c0_1 = arith.constant 0 : index
    %c0_2 = arith.constant 0 : index
    %1 = vector.load %arg2[%c0_1, %c0_2] : memref<64x128xbf16, #tpu.memory_space<vmem>>, vector<64x128xbf16>
    %cst = arith.constant dense<0.000000e+00> : vector<64x128xf32>
    %2 = tpu.matmul %0, %1, %cst {dimension_numbers = #tpu.dot_dimension_numbers<[1], [0], [0], [1], [0, 0, 1, 1], [], []>} : vector<64x64xbf16>, vector<64x128xbf16>, vector<64x128xf32> -> vector<64x128xf32>
    %c0_3 = arith.constant 0 : index
    %c0_4 = arith.constant 0 : index
    %3 = vector.load %arg6[%c0_3, %c0_4] : memref<64x128xf32, #tpu.memory_space<vmem>>, vector<64x128xf32>
    tpu.vector_store %arg6[%c0_3, %c0_4], %2 {strides = array<i32>} : memref<64x128xf32, #tpu.memory_space<vmem>>, vector<64x128xf32>,
    %c0_5 = arith.constant 0 : index
    %c0_6 = arith.constant 0 : index
    %4 = vector.load %arg3[%c0_5, %c0_6] : memref<1x128xf32, #tpu.memory_space<vmem>>, vector<1x128xf32>
    %c0_7 = arith.constant 0 : index
    %c0_8 = arith.constant 0 : index
    %5 = vector.load %arg4[%c0_7, %c0_8] : memref<1x128xf32, #tpu.memory_space<vmem>>, vector<1x128xf32>
    %c0_9 = arith.constant 0 : index
    %c0_10 = arith.constant 0 : index
    %6 = vector.load %arg6[%c0_9, %c0_10] : memref<64x128xf32, #tpu.memory_space<vmem>>, vector<64x128xf32>
    %cst_11 = arith.constant dense<0.000000e+00> : vector<128xf32>
    %7 = vector.multi_reduction <add>, %6, %cst_11 [0] : vector<64x128xf32> to vector<128xf32>
    %8 = vector.shape_cast %7 : vector<128xf32> to vector<1x128xf32>
    %cst_12 = arith.constant 6.400000e+01 : f32
    %9 = vector.broadcast %cst_12 : f32 to vector<1x128xf32>
    %10 = arith.divf %8, %9 : vector<1x128xf32>
    %11 = vector.broadcast %10 : vector<1x128xf32> to vector<64x128xf32>
    %12 = arith.subf %6, %11 : vector<64x128xf32>
    %13 = arith.mulf %12, %12 : vector<64x128xf32>
    %cst_13 = arith.constant dense<0.000000e+00> : vector<128xf32>
    %14 = vector.multi_reduction <add>, %13, %cst_13 [0] : vector<64x128xf32> to vector<128xf32>
    %15 = vector.shape_cast %14 : vector<128xf32> to vector<1x128xf32>
    %cst_14 = arith.constant 6.400000e+01 : f32
    %16 = vector.broadcast %cst_14 : f32 to vector<1x128xf32>
    %17 = arith.divf %15, %16 : vector<1x128xf32>
    %cst_15 = arith.constant 9.99999974E-6 : f32
    %18 = vector.broadcast %cst_15 : f32 to vector<1x128xf32>
    %19 = arith.addf %17, %18 : vector<1x128xf32>
    %20 = math.rsqrt %19 : vector<1x128xf32>
    %21 = vector.broadcast %20 : vector<1x128xf32> to vector<64x128xf32>
    %22 = arith.mulf %12, %21 : vector<64x128xf32>
    %23 = vector.broadcast %4 : vector<1x128xf32> to vector<64x128xf32>
    %24 = arith.mulf %22, %23 : vector<64x128xf32>
    %25 = vector.broadcast %5 : vector<1x128xf32> to vector<64x128xf32>
    %26 = arith.addf %24, %25 : vector<64x128xf32>
    %cst_16 = arith.constant 0.000000e+00 : f32
    %27 = vector.broadcast %cst_16 : f32 to vector<64x128xf32>
    %28 = arith.cmpf oge, %26, %27 : vector<64x128xf32>
    %cst_17 = arith.constant 2.000000e-01 : f32
    %29 = vector.broadcast %cst_17 : f32 to vector<64x128xf32>
    %30 = arith.mulf %29, %26 : vector<64x128xf32>
    %31 = arith.select %28, %26, %30 : vector<64x128xi1>, vector<64x128xf32>
    %32 = arith.truncf %31 : vector<64x128xf32> to vector<64x128xbf16>
    %c0_18 = arith.constant 0 : index
    %c0_19 = arith.constant 0 : index
    %33 = vector.load %arg5[%c0_18, %c0_19] : memref<64x128xbf16, #tpu.memory_space<vmem>>, vector<64x128xbf16>
    tpu.vector_store %arg5[%c0_18, %c0_19], %32 {strides = array<i32>} : memref<64x128xbf16, #tpu.memory_space<vmem>>, vector<64x128xbf16>,
    return
  }
  func.func @transform_0(%arg0: i32) -> (i32, i32) {
    %c0_i32 = arith.constant 0 : i32
    %c0_i32_0 = arith.constant 0 : i32
    return %arg0, %c0_i32 : i32, i32
  }
  func.func @transform_1(%arg0: i32) -> (i32, i32) {
    %c0_i32 = arith.constant 0 : i32
    %c0_i32_0 = arith.constant 0 : i32
    %c0_i32_1 = arith.constant 0 : i32
    return %c0_i32, %c0_i32_0 : i32, i32
  }
  func.func @transform_2(%arg0: i32) -> (i32, i32) {
    %c0_i32 = arith.constant 0 : i32
    %c0_i32_0 = arith.constant 0 : i32
    %c0_i32_1 = arith.constant 0 : i32
    return %c0_i32, %c0_i32_0 : i32, i32
  }
  func.func @transform_3(%arg0: i32) -> (i32, i32) {
    %c0_i32 = arith.constant 0 : i32
    %c0_i32_0 = arith.constant 0 : i32
    %c0_i32_1 = arith.constant 0 : i32
    return %c0_i32, %c0_i32_0 : i32, i32
  }
  func.func @transform_4(%arg0: i32) -> (i32, i32) {
    %c0_i32 = arith.constant 0 : i32
    %c0_i32_0 = arith.constant 0 : i32
    return %arg0, %c0_i32 : i32, i32
  }
}

</mosaic_0001>

<bundles_post_ra>
// kernel: tpu_custom_call.1
= control target key start
LH: loop header
LB: loop body
LE: loop exit
PB: predicated region body
PF: predicated region fallthrough
CT: control target
= control target key end

     0   :  { %9 = vsyncpa [#allocation4], 0  ;;  %s872_s0 = inlined_call_operand.vmem [shape: bf16[128,64], index: 0, kind: input, shape index: {}]   ;;  %s873_s1 = inlined_call_operand.vmem [shape: bf16[64,128], index: 1, kind: input, shape index: {}]   ;;  %s874_s2 = inlined_call_operand.vmem [shape: f32[1,128], index: 2, kind: input, shape index: {}]   ;;  %s875_s3 = inlined_call_operand.vmem [shape: f32[1,128], index: 3, kind: input, shape index: {}]   ;;  %s876_s4 = inlined_call_operand.hbm [shape: bf16[128,128], index: 4, kind: output, shape index: {}]  }
   0x1   :  { %11 = vsyncpa [#allocation4 + $0x1], 0  ;;  %s762_s15 = smov 0   ;;  %s764_s16 = smov 0  }
   0x2   :  { %s766_s17 = smov 0   ;;  %s768_s18 = smov 0  }
   0x3 LB: > { %s783_s19 = sadd.s32 4294967295, %s732_s18   ;;  %s530_s20 = sadd.s32 4294967294, %s732_s18   ;;  %s732_s18 = sphi %s768_s18, %s882_s18   ;;  %s728_s17 = sphi %s766_s17, %s881_s17   ;;  %s724_s16 = sphi %s764_s16, %s880_s16   ;;  %s720_s15 = sphi %s762_s15, %s879_s15  }
   0x4   : > { %s787_s21 = sadd.s32 1, %s732_s18   ;;  %s113_s22 = sadd.s32 1, %s728_s17 }
   0x5   : > { %s110_s23 = ssub.s32 %s732_s18, %s787_s21  ;;  %p123_p0 = scmp.ne.s32.totalorder %s728_s17, %s724_s16 }
   0x6   : > { %p111_p1 = scmp.eq.s32.totalorder %s110_s23, 0  ;;  %p124_p2 = scmp.eq.s32.totalorder %s783_s19, 1 }
   0x7   : > { %p129_p3 = scmp.ne.s32.totalorder %s724_s16, %s720_s15  ;;  %p130_p4 = scmp.eq.s32.totalorder %s530_s20, 1 }
   0x8   : > { %s798_s24 = scalar_select %p111_p1, %s728_s17, %s113_s22  }
   0x9   : > { %p800_p5 = por %p124_p2, %p123_p0  ;;  %p804_p6 = por %p130_p4, %p129_p3 }
   0xa   : > { %p533_p7 = scmp.ge.s32.totalorder %s732_s18, 1  ;;  %p166_p8 = scmp.lt.s32.totalorder %s732_s18, 3 }
   0xc   : > { %p167_p9 = pnand %p533_p7, %p166_p8 }
   0xd   : > { %s535_s29 = sshll.u32 (!%p167_p9), %s783_s19, 3  ;;  %s189_s27 = sand.u32 (!%p167_p9), 1, %s724_s16  }
   0xe   : > { %170 = sbr.rel (%p167_p9) target bundleno = 269 (0x10d), region = 36  ;;  %p193_p10 = scmp.lt.s32.totalorder (!%p167_p9), %s535_s29, 15 }
   0xf   : > { %s534_s28 = sshll.u32 (!%p167_p9), %s189_s27, 5  ;;  %s453_s9 = scalar_lea.sflag (!%p167_p9), [#allocation4], %s189_s27 }
  0x10   : > { %s690_s14 = scalar_lea.hbm (!%p167_p9), %s876_s4, 64 }
  0x13   : > { %v585_v0 = vld [vmem:[%s873_s1 + $0x18] sm:$0xff]  ;;  %v584_v1 = vld [vmem:[%s873_s1 + $0x10] sm:$0xff]  ;;  %s884_s29 = smov (!%p193_p10, %s535_s29), 15  ;;  %v583_v2 = vld [vmem:[%s873_s1 + $0x8] sm:$0xff]  ;;  %vm260_vm0 = vcmask 523264   ;;  %v734_v11 = vmov 64.0  }
  0x14   : > { %277 = vmatpush.bf16.msra.mxu0 %v585_v0  ;;  %610 = vmatpush.bf16.msra.mxu1 %v585_v0  ;;  %s536_s8 = sshll.u32 %s884_s29, 2  ;;  %v582_v3 = vld [vmem:[%s873_s1] sm:$0xff]  ;;  %666 = vrcp.f32 %v734_v11  ;;  %s586_s29 = sshll.u32 %s783_s19, 5 }
  0x15   : > { %611 = vmatpush.bf16.msra.mxu2 %v585_v0  ;;  %612 = vmatpush.bf16.msra.mxu3 %v585_v0  ;;  %s196_s13 = scalar_lea.vmem %s872_s0, %s536_s8  ;;  %s464_s6 = scalar_lea.hbm %s876_s4, %s586_s29 }
  0x16   : > { %v578_v4 = vld [vmem:[%s196_s13] sm:$0xff]  ;;  %v579_v5 = vld [vmem:[%s196_s13 + $0x8] sm:$0xff]  ;;  %v580_v6 = vld [vmem:[%s196_s13 + $0x10] sm:$0xff]  ;;  %s191_s19 = scalar_lea.vmem [#allocation3], %s534_s28  ;;  %s467_s8 = sshll.u32 %s464_s6, 4  ;;  %s468_s8 = int_to_ptr.hbm [resolvable:$true] %s467_s8 }
  0x17   : > { %v581_v7 = vld [vmem:[%s196_s13 + $0x18] sm:$0xff]  ;;  %s465_s7 = sshll.u32 %s191_s19, 4  ;;  %s684_s10 = sshra.s32 %s468_s8, 4  ;;  %s466_s7 = int_to_ptr.vmem [resolvable:$true] %s465_s7  ;;  %s685_s10 = int_to_ptr.hbm [resolvable:$true] %s684_s10 }
  0x18   : > { %278 = vmatpush.bf16.msra.mxu0 %v584_v1  ;;  %613 = vmatpush.bf16.msra.mxu1 %v584_v1  ;;  %s686_s11 = scalar_lea.hbm %s685_s10, 32  ;;  %p691_p0 = scmp.lt.s32.totalorder %s685_s10, %s876_s4 }
  0x19   : > { %614 = vmatpush.bf16.msra.mxu2 %v584_v1  ;;  %615 = vmatpush.bf16.msra.mxu3 %v584_v1  ;;  %p687_p11 = scmp.ne.s32.totalorder %s685_s10, %s686_s11  ;;  %p692_p1 = scmp.lt.s32.totalorder %s690_s14, %s686_s11 }
  0x1a   : > { %v667_v17 = vpop.eup %666 }
  0x1b   : > { %v334_v21 = vmul.f32 64.0, %v667_v17  ;;  %vm338_vm1 = vweird.f32 %v667_v17  ;;  %p688_p12 = pnand %p687_p11, %p800_p5  ;;  %p693_p2 = por %p692_p1, %p691_p0 }
  0x1c   : > { %279 = vmatpush.bf16.msra.mxu0 %v583_v2  ;;  %616 = vmatpush.bf16.msra.mxu1 %v583_v2 }
  0x1d   : > { %617 = vmatpush.bf16.msra.mxu2 %v583_v2  ;;  %618 = vmatpush.bf16.msra.mxu3 %v583_v2  ;;  %v335_v25 = vsub.f32 1.0, %v334_v21  ;;  %p689_p13 = pneg %p688_p12 }
  0x1f   : > { %v336_v28 = vmul.f32 %v667_v17, %v335_v25  ;;  %p694_p3 = pnand %p693_p2, %p689_p13 }
  0x20   : > { %280 = vmatpush.bf16.msra.mxu0 %v582_v3  ;;  %619 = vmatpush.bf16.msra.mxu1 %v582_v3 }
  0x21   : > { %620 = vmatpush.bf16.msra.mxu2 %v582_v3  ;;  %621 = vmatpush.bf16.msra.mxu3 %v582_v3  ;;  %v337_v31 = vadd.f32 %v667_v17, %v336_v28 }
  0x23   : > { %569 = vmatmul.msk.bf16.vlgmr.msra.gmra.mxu0 %vm260_vm0, %v578_v4  ;;  %570 = vmatmul.msk.bf16.vlgmr.msra.gmra.mxu1 %vm260_vm0, %v579_v5  ;;  %v339_v34 = vsel %vm338_vm1, %v667_v17, %v337_v31 }
  0x24   : > { %571 = vmatmul.msk.bf16.vlgmr.msra.gmra.mxu2 %vm260_vm0, %v580_v6  ;;  %572 = vmatmul.msk.bf16.vlgmr.msra.gmra.mxu3 %vm260_vm0, %v581_v7 }
  0xa0   : > { %v282_v8 = vpop.f32.mrf.mxu0  ;;  %v287_v9 = vpop.f32.mrf.mxu1 }
  0xa7   : > { %v292_v10 = vpop.f32.mrf.mxu2  ;;  %v297_v14 = vpop.f32.mrf.mxu3 }
  0xa8   : > { %v284_v12 = vpop.f32.mrf.mxu0  ;;  %v289_v16 = vpop.f32.mrf.mxu1 }
  0xa9   : > { %v320_v13 = vadd.f32 %v284_v12, %v282_v8 }
  0xab   : > { %v321_v15 = vadd.f32 %v320_v13, %v287_v9 }
  0xad   : > { %v322_v18 = vadd.f32 %v321_v15, %v289_v16 }
  0xaf   : > { %v323_v19 = vadd.f32 %v322_v18, %v292_v10  ;;  %v294_v20 = vpop.f32.mrf.mxu2  ;;  %v299_v24 = vpop.f32.mrf.mxu3 }
  0xb1   : > { %v324_v22 = vadd.f32 %v323_v19, %v294_v20 }
  0xb3   : > { %v325_v23 = vadd.f32 %v324_v22, %v297_v14 }
  0xb5   : > { %v326_v26 = vadd.f32 %v325_v23, %v299_v24 }
  0xb7   : > { %v327_v27 = vrot.slane %v326_v26, 4 }
  0xb9   : > { %v328_v29 = vadd.f32 %v327_v27, %v326_v26 }
  0xbb   : > { %v329_v30 = vrot.slane %v328_v29, 2 }
  0xbd   : > { %v330_v32 = vadd.f32 %v329_v30, %v328_v29 }
  0xbf   : > { %v331_v33 = vrot.slane %v330_v32, 1 }
  0xc1   : > { %v332_v35 = vadd.f32 %v331_v33, %v330_v32 }
  0xc3   : > { %v340_v36 = vmul.f32 %v339_v34, %v332_v35 }
  0xc5   : > { %v341_v37 = vsub.f32 %v282_v8, %v340_v36  ;;  %v342_v38 = vsub.f32 %v284_v12, %v340_v36  ;;  %v343_v39 = vsub.f32 %v287_v9, %v340_v36  ;;  %v344_v40 = vsub.f32 %v289_v16, %v340_v36  ;;  %v665_v16 = vld [vmem:[%s875_s3] ss:$0 sm:$0xff] }
  0xc6   : > { %v345_v43 = vsub.f32 %v292_v10, %v340_v36  ;;  %v346_v46 = vsub.f32 %v294_v20, %v340_v36  ;;  %v347_v49 = vsub.f32 %v297_v14, %v340_v36  ;;  %v348_v52 = vsub.f32 %v299_v24, %v340_v36  ;;  %v664_v10 = vld [vmem:[%s874_s2] ss:$0 sm:$0xff] }
  0xc7   : > { %v349_v41 = vmul.f32 %v341_v37, %v341_v37  ;;  %v350_v42 = vmul.f32 %v342_v38, %v342_v38  ;;  %v351_v44 = vmul.f32 %v343_v39, %v343_v39  ;;  %v352_v47 = vmul.f32 %v344_v40, %v344_v40 }
  0xc8   : > { %v353_v50 = vmul.f32 %v345_v43, %v345_v43  ;;  %v354_v53 = vmul.f32 %v346_v46, %v346_v46  ;;  %v355_v55 = vmul.f32 %v347_v49, %v347_v49  ;;  %v356_v57 = vmul.f32 %v348_v52, %v348_v52 }
  0xc9   : > { %v357_v45 = vadd.f32 %v350_v42, %v349_v41 }
  0xcb   : > { %v358_v48 = vadd.f32 %v357_v45, %v351_v44 }
  0xcd   : > { %v359_v51 = vadd.f32 %v358_v48, %v352_v47 }
  0xcf   : > { %v360_v54 = vadd.f32 %v359_v51, %v353_v50 }
  0xd1   : > { %v361_v56 = vadd.f32 %v360_v54, %v354_v53 }
  0xd3   : > { %v362_v58 = vadd.f32 %v361_v56, %v355_v55 }
  0xd5   : > { %v363_v59 = vadd.f32 %v362_v58, %v356_v57 }
  0xd7   : > { %v364_v60 = vrot.slane %v363_v59, 4 }
  0xd9   : > { %v365_v61 = vadd.f32 %v364_v60, %v363_v59 }
  0xdb   : > { %v366_v62 = vrot.slane %v365_v61, 2 }
  0xdd   : > { %v367_v63 = vadd.f32 %v366_v62, %v365_v61 }
  0xdf   : > { %v368_v0 = vrot.slane %v367_v63, 1 }
  0xe1   : > { %v369_v1 = vadd.f32 %v368_v0, %v367_v63 }
  0xe3   : > { %v370_v2 = vmul.f32 %v369_v1, %v339_v34 }
  0xe5   : > { %v371_v3 = vadd.f32 1e-05, %v370_v2 }
  0xe7   : > { %668 = vrsqrt.f32 %v371_v3  ;;  %vm378_vm3 = vweird.f32 %v371_v3 }
  0xed   : > { %v669_v4 = vpop.eup %668 }
  0xee   : > { %v373_v5 = vmul.f32 %v669_v4, %v371_v3  ;;  %vm379_vm2 = vweird.f32 %v669_v4 }
  0xef   : > { %vm380_vm4 = vmor %vm378_vm3, %vm379_vm2 }
  0xf0   : > { %v374_v6 = vmul.f32 %v669_v4, %v373_v5 }
  0xf2   : > { %v375_v7 = vmul.f32 0.5, %v374_v6 }
  0xf4   : > { %v376_v8 = vsub.f32 1.5, %v375_v7 }
  0xf6   : > { %v377_v9 = vmul.f32 %v669_v4, %v376_v8 }
  0xf8   : > { %v381_v11 = vsel %vm380_vm4, %v669_v4, %v377_v9 }
  0xf9   : > { %v382_v12 = vmul.f32 %v381_v11, %v341_v37  ;;  %v383_v13 = vmul.f32 %v381_v11, %v342_v38  ;;  %v384_v14 = vmul.f32 %v381_v11, %v343_v39  ;;  %v385_v15 = vmul.f32 %v381_v11, %v344_v40 }
  0xfa   : > { %v386_v17 = vmul.f32 %v381_v11, %v345_v43  ;;  %v387_v18 = vmul.f32 %v381_v11, %v346_v46  ;;  %v388_v19 = vmul.f32 %v381_v11, %v347_v49  ;;  %v389_v20 = vmul.f32 %v381_v11, %v348_v52 }
  0xfb   : > { %v393_v21 = vmul.f32 %v664_v10, %v382_v12  ;;  %v394_v22 = vmul.f32 %v664_v10, %v383_v13  ;;  %v395_v23 = vmul.f32 %v664_v10, %v384_v14  ;;  %v396_v24 = vmul.f32 %v664_v10, %v385_v15 }
  0xfc   : > { %v397_v25 = vmul.f32 %v664_v10, %v386_v17  ;;  %v398_v26 = vmul.f32 %v664_v10, %v387_v18  ;;  %v399_v27 = vmul.f32 %v664_v10, %v388_v19  ;;  %v400_v28 = vmul.f32 %v664_v10, %v389_v20 }
  0xfd   : > { %v404_v29 = vadd.f32 %v665_v16, %v393_v21  ;;  %v405_v30 = vadd.f32 %v665_v16, %v394_v22  ;;  %v406_v31 = vadd.f32 %v665_v16, %v395_v23  ;;  %v407_v32 = vadd.f32 %v665_v16, %v396_v24 }
  0xfe   : > { %v408_v33 = vadd.f32 %v665_v16, %v397_v25  ;;  %v409_v34 = vadd.f32 %v665_v16, %v398_v26  ;;  %v410_v35 = vadd.f32 %v665_v16, %v399_v27  ;;  %v411_v36 = vadd.f32 %v665_v16, %v400_v28 }
  0xff   : > { %v423_v37 = vmul.f32 0.2, %v407_v32  ;;  %vm412_vm5 = vcmp.ge.f32.partialorder %v404_v29, 0.0  ;;  %vm413_vm6 = vcmp.ge.f32.partialorder %v405_v30, 0.0  ;;  %vm414_vm7 = vcmp.ge.f32.partialorder %v406_v31, 0.0 }
 0x100   : > { %vm417_vm8 = vcmp.ge.f32.partialorder %v409_v34, 0.0  ;;  %vm418_vm9 = vcmp.ge.f32.partialorder %v410_v35, 0.0  ;;  %vm419_vm10 = vcmp.ge.f32.partialorder %v411_v36, 0.0  ;;  %v424_v38 = vmul.f32 0.2, %v408_v33 }
 0x101   : > { %v425_v39 = vmul.f32 0.2, %v409_v34  ;;  %v426_v40 = vmul.f32 0.2, %v410_v35  ;;  %v427_v41 = vmul.f32 0.2, %v411_v36 }
 0x102   : > { %vm415_vm11 = vcmp.ge.f32.partialorder %v407_v32, 0.0  ;;  %vm416_vm12 = vcmp.ge.f32.partialorder %v408_v33, 0.0  ;;  %v420_v42 = vmul.f32 0.2, %v404_v29  ;;  %v421_v43 = vmul.f32 0.2, %v405_v30 }
 0x103   : > { %v434_v44 = vsel %vm418_vm9, %v410_v35, %v426_v40  ;;  %v435_v45 = vsel %vm419_vm10, %v411_v36, %v427_v41  ;;  %v422_v46 = vmul.f32 0.2, %v406_v31  ;;  %v431_v47 = vsel %vm415_vm11, %v407_v32, %v423_v37 }
 0x104   : > { %v605_v48 = vpack.c.bf16 %v435_v45, %v434_v44  ;;  %v428_v49 = vsel %vm412_vm5, %v404_v29, %v420_v42  ;;  %v429_v50 = vsel %vm413_vm6, %v405_v30, %v421_v43  ;;  %v432_v51 = vsel %vm416_vm12, %v408_v33, %v424_v38 }
 0x105   : > { %v430_v52 = vsel %vm414_vm7, %v406_v31, %v422_v46  ;;  %v433_v53 = vsel %vm417_vm8, %v409_v34, %v425_v39  ;;  %v590_v54 = vpack.c.bf16 %v429_v50, %v428_v49 }
 0x106   : > { %609 = vst [vmem:[%s191_s19 + $0x18] sm:$0xff] %v605_v48   ;;  %v595_v55 = vpack.c.bf16 %v431_v47, %v430_v52  ;;  %v600_v56 = vpack.c.bf16 %v433_v53, %v432_v51 }
 0x107   : > { %591 = vst [vmem:[%s191_s19] sm:$0xff] %v590_v54  }
 0x108   : > { %607 = vst [vmem:[%s191_s19 + $0x8] sm:$0xff] %v595_v55  }
 0x109   : > { %608 = vst [vmem:[%s191_s19 + $0x10] sm:$0xff] %v600_v56  }
 0x10a   : > { %697 = shalt.err (!%p694_p3)
}
 0x10b   : > { %s735_s23 = smov 64   ;;  %s736_s27 = smov 4  }
 0x10c   : > { %622 = dma.vmem_to_hbm [thread:$0]  (%p800_p5), %s466_s7, 512, %s468_s8, %s453_s9, %s735_s23, %s735_s23, %s736_s27  }
 0x10d PF: > { %p628_p4 = scmp.ge.s32.totalorder %s732_s18, 2  ;;  %s482_s28 = sand.u32 1, %s720_s15  }
 0x10e   : > { %s483_s29 = scalar_lea.sflag [#allocation4], %s482_s28 }
 0x10f   : > { %p625_p7 = pnand %p628_p4, %p804_p6 }
 0x111   : > { %p626_p8 = pneg %p625_p7 }
 0x113   : > { %715 = dma.done.wait (%p626_p8), %s483_s29, 512  }
 0x114   : > { %717 = vsyncadd (%p626_p8), %s483_s29, 4294966784  ;;  %p14_p9 = scmp.ge.s32.totalorder %s787_s21, 4   ;;  %s879_s15 = smov %s724_s16 }
 0x115   : > { %s880_s16 = smov %s728_s17  ;;  %s881_s17 = smov %s798_s24 }
 0x116   : > { %s882_s18 = smov %s787_s21  ;;  %16 = sbr.rel (!%p14_p9) target bundleno = 3 (0x3), region = 71 }
 0x11b   :  { %489 = vsyncpa [#allocation4], 1 }
 0x11c   :  { %491 = vsyncpa [#allocation4 + $0x1], 1 }

</bundles_post_ra>
